<compile_context>
chip_gen: v5e
topology: v5e:2x2
jax: 0.10.0
libtpu: 0.0.40
codegen_flags: <defaults>
</compile_context>

<pallas_src>
import jax
import jax.numpy as jnp
from jax.experimental import pallas as pl
from jax.experimental.pallas import tpu as pltpu


def _copy_kernel(x_ref, o_ref):
    # Input and output tiles have identical (TB, C) shapes and layouts:
    # a straight VMEM copy, no relayout, no compute.
    o_ref[...] = x_ref[...]


def squeeze_last_two(x: jax.Array) -> jax.Array:
    """Pallas equivalent of SqueezeLastTwo.forward: x.view(B, C)."""
    assert x.ndim == 4 and x.shape[2] == 1 and x.shape[3] == 1, (
        "SqueezeLastTwo expects (B, C, 1, 1) input"
    )
    B, C = x.shape[0], x.shape[1]

    # Metadata-only squeeze: present the kernel with a dense (B, C) slab so
    # the lane dim is C and the sublane dim is B (no padded (1,1) tiles).
    x2d = x.reshape(B, C)

    # Row tiling: full array when small; 512-row tiles (multiple of 8) when
    # large so VMEM stays bounded and the grid axis pipelines / shards.
    TB = 512 if B > 512 else B
    grid = (pl.cdiv(B, TB),)

    return pl.pallas_call(
        _copy_kernel,
        out_shape=jax.ShapeDtypeStruct((B, C), x.dtype),
        grid=grid,
        in_specs=[pl.BlockSpec((TB, C), lambda i: (i, 0))],
        out_specs=pl.BlockSpec((TB, C), lambda i: (i, 0)),
        compiler_params=pltpu.CompilerParams(
            dimension_semantics=("parallel",)
        ),
    )(x2d)


if __name__ == "__main__":
    key = jax.random.PRNGKey(0)

    # Small shape consistent with the module's intended use: (B, C, 1, 1).
    B, C = 2, 4
    x = jax.random.normal(key, (B, C, 1, 1), dtype=jnp.float32)

    y = squeeze_last_two(x)
    jax.block_until_ready(y)

    y_ref = x.reshape(B, C)
    assert y.shape == (B, C), y.shape
    assert y.dtype == x.dtype, y.dtype
    assert jnp.array_equal(y, y_ref), "mismatch vs reference reshape"

    # Lane-dense case (the real MNIST_CNN path: C == 128).
    key2 = jax.random.PRNGKey(1)
    B2, C2 = 16, 128
    x2 = jax.random.normal(key2, (B2, C2, 1, 1), dtype=jnp.float32)
    y2 = squeeze_last_two(x2)
    jax.block_until_ready(y2)
    assert jnp.array_equal(y2, x2.reshape(B2, C2)), "mismatch (lane-dense case)"

    print("KERNEL_OK")
</pallas_src>

<mosaic_0001>
module attributes {stable_mosaic.version = 11 : i64} {
  func.func @_copy_kernel(%arg0: i32, %arg1: memref<2x4xf32, #tpu.memory_space<vmem>>, %arg2: memref<2x4xf32, #tpu.memory_space<vmem>>) attributes {dimension_semantics = [#tpu.dimension_semantics<parallel>], iteration_bounds = array<i64: 1>, scalar_prefetch = 0 : i64, scratch_operands = 0 : i64, tpu.core_type = #tpu.core_type<tc>, window_params = [{transform_indices = @transform_0, window_bounds = array<i64: 2, 4>}, {transform_indices = @transform_1, window_bounds = array<i64: 2, 4>}]} {
    %c0 = arith.constant 0 : index
    %c0_0 = arith.constant 0 : index
    %0 = vector.load %arg1[%c0, %c0_0] : memref<2x4xf32, #tpu.memory_space<vmem>>, vector<2x4xf32>
    %c0_1 = arith.constant 0 : index
    %c0_2 = arith.constant 0 : index
    %1 = vector.load %arg2[%c0_1, %c0_2] : memref<2x4xf32, #tpu.memory_space<vmem>>, vector<2x4xf32>
    tpu.vector_store %arg2[%c0_1, %c0_2], %0 {strides = array<i32>} : memref<2x4xf32, #tpu.memory_space<vmem>>, vector<2x4xf32>,
    return
  }
  func.func @transform_0(%arg0: i32) -> (i32, i32) {
    %c0_i32 = arith.constant 0 : i32
    %c0_i32_0 = arith.constant 0 : i32
    return %arg0, %c0_i32 : i32, i32
  }
  func.func @transform_1(%arg0: i32) -> (i32, i32) {
    %c0_i32 = arith.constant 0 : i32
    %c0_i32_0 = arith.constant 0 : i32
    return %arg0, %c0_i32 : i32, i32
  }
}

</mosaic_0001>

<bundles_post_ra>
// kernel: tpu_custom_call.1
= control target key start
LH: loop header
LB: loop body
LE: loop exit
PB: predicated region body
PF: predicated region fallthrough
CT: control target
= control target key end

     0   :  { %6 = vsyncpa [#allocation3], 0  ;;  %s115_s0 = inlined_call_operand.hbm [shape: f32[2,4], index: 0, kind: input, shape index: {}]   ;;  %s116_s1 = inlined_call_operand.hbm [shape: f32[2,4], index: 1, kind: output, shape index: {}]  }
   0x1   :  { %7 = vsyncpa [#allocation4], 0  ;;  %s13_s8 = sshll.u32 %s115_s0, 4  ;;  %s97_s9 = smov [#allocation2]   ;;  %s14_s8 = int_to_ptr.hbm [resolvable:$true] %s13_s8 }
   0x2   :  { %s15_s10 = sshll.u32 %s97_s9, 4  ;;  %s16_s10 = int_to_ptr.vmem [resolvable:$true] %s15_s10 }
   0x3   :  { %18 = dma.hbm_to_vmem [thread:$0]  %s14_s8, 32, %s16_s10, [#allocation3]  }
   0x4   :  { %93 = dma.done.wait [#allocation3], 32  }
   0x5   :  { %94 = vsyncadd [#allocation3], 4294967264  ;;  %s98_s11 = smov [#allocation5]   ;;  %s33_s15 = sshll.u32 %s116_s1, 4  ;;  %vm24_vm0 = vcmask 25600   ;;  %s34_s15 = int_to_ptr.hbm [resolvable:$true] %s33_s15 }
   0x6   :  { %s31_s12 = sshll.u32 %s98_s11, 4  ;;  %v23_v0 = vld [vmem:[#allocation2] sm:$0x3]  ;;  %s32_s12 = int_to_ptr.vmem [resolvable:$true] %s31_s12 }
   0x7   :  { %25 = vst.msk [vmem:[#allocation5] sm:$0x3] %vm24_vm0, %v23_v0 }
   0x8   :  { %36 = dma.vmem_to_hbm [thread:$0]  %s32_s12, 32, %s34_s15, [#allocation4]  }
   0x9   :  { %95 = dma.done.wait [#allocation4], 32  }
   0xa   :  { %96 = vsyncadd [#allocation4], 4294967264 }
   0xb   :  { %41 = vsyncpa [#allocation3], 1 }
   0xc   :  { %42 = vsyncpa [#allocation4], 1 }

</bundles_post_ra>
